<compile_context>
chip_gen: v5e
topology: v5e:2x2
jax: 0.10.0
libtpu: 0.0.40
codegen_flags: <defaults>
</compile_context>

<pallas_src>
import math

import jax
import jax.numpy as jnp
from jax.experimental import pallas as pl
from jax.experimental.pallas import tpu as pltpu

_NEG_INF = -1e30  # finite mask value (avoids -inf arithmetic in the online softmax)
_VMEM_LIMIT = 64 * 1024 * 1024  # above the 16/32 MiB scoped defaults, safe on v5e/v6e/v7x


# ---------------------------------------------------------------------------
# Tiled matmul kernel (fused QKV projection and O projection)
# ---------------------------------------------------------------------------
def _matmul_kernel(x_ref, w_ref, o_ref, acc_ref):
    @pl.when(pl.program_id(2) == 0)
    def _init():
        acc_ref[...] = jnp.zeros_like(acc_ref)

    # bf16 operands on the MXU, f32 accumulation.
    acc_ref[...] += jnp.dot(x_ref[...].astype(jnp.bfloat16),
                            w_ref[...].astype(jnp.bfloat16),
                            preferred_element_type=jnp.float32)

    @pl.when(pl.program_id(2) == pl.num_programs(2) - 1)
    def _done():
        o_ref[...] = acc_ref[...].astype(o_ref.dtype)


def _pick_tile(dim, cap):
    if dim <= cap:
        return dim            # full extent is always a legal block
    if dim % cap == 0:
        return cap            # cap (512) is a multiple of (8, 128)
    # TODO(synk): pad ragged dims instead of falling back to a full-extent block.
    return dim


def matmul_pallas(x, w_t, out_dtype, *, tm=512, tn=512, tk=512):
    """y = x @ w_t with bf16 MXU operands, f32 accumulation, tiled + pipelined."""
    m, k = x.shape
    k2, n = w_t.shape
    assert k == k2
    bm, bn, bk = _pick_tile(m, tm), _pick_tile(n, tn), _pick_tile(k, tk)
    return pl.pallas_call(
        _matmul_kernel,
        out_shape=jax.ShapeDtypeStruct((m, n), out_dtype),
        grid=(m // bm, n // bn, k // bk),
        in_specs=[pl.BlockSpec((bm, bk), lambda i, j, kk: (i, kk)),
                  pl.BlockSpec((bk, bn), lambda i, j, kk: (kk, j))],
        out_specs=pl.BlockSpec((bm, bn), lambda i, j, kk: (i, j)),
        scratch_shapes=[pltpu.VMEM((bm, bn), jnp.float32)],
        compiler_params=pltpu.CompilerParams(
            dimension_semantics=("parallel", "parallel", "arbitrary"),
            vmem_limit_bytes=_VMEM_LIMIT),
    )(x, w_t)


# ---------------------------------------------------------------------------
# Causal flash-attention kernel (one (b, kv-group) pair per parallel program,
# kv tiles on the innermost "arbitrary" axis, un-repeated V)
# ---------------------------------------------------------------------------
def _gqa_flash_kernel(q_ref, k_ref, v_ref, cosq_ref, sinq_ref, cosk_ref, sink_ref,
                      o_ref, qr_ref, m_ref, l_ref, acc_ref):
    # Block shapes:
    #   q_ref, k_ref : (1, 1, 2, bt, Dh)   RoPE halves stacked on a leading axis
    #   v_ref        : (1, 1, bt, hd)      un-repeated V
    #   cos*/sin*    : (bt, Dh)            q tables carry the 1/sqrt(D3) scale
    #   o_ref        : (1, 1, bt, hd)
    # Scratch: qr (2, bt, Dh) bf16 ; m, l (bt, 1) f32 ; acc (bt, hd) f32.
    qi = pl.program_id(2)
    kj = pl.program_id(3)
    bt = q_ref.shape[3]  # block_q == block_k

    @pl.when(kj == 0)
    def _init():
        m_ref[...] = jnp.full(m_ref.shape, _NEG_INF, jnp.float32)
        l_ref[...] = jnp.zeros_like(l_ref)
        acc_ref[...] = jnp.zeros_like(acc_ref)
        # rope(q) once per q tile (f32 VPU math), cached in scratch as bf16.
        q1 = q_ref[0, 0, 0].astype(jnp.float32)
        q2 = q_ref[0, 0, 1].astype(jnp.float32)
        cq = cosq_ref[...]
        sq = sinq_ref[...]
        qr_ref[0] = (q1 * cq - q2 * sq).astype(jnp.bfloat16)
        qr_ref[1] = (q2 * cq + q1 * sq).astype(jnp.bfloat16)

    # Causal: kv tile kj only contributes when kj <= qi (block_q == block_k).
    @pl.when(kj <= qi)
    def _compute():
        k1 = k_ref[0, 0, 0].astype(jnp.float32)
        k2 = k_ref[0, 0, 1].astype(jnp.float32)
        ck = cosk_ref[...]
        sk = sink_ref[...]
        kr1 = (k1 * ck - k2 * sk).astype(jnp.bfloat16)
        kr2 = (k2 * ck + k1 * sk).astype(jnp.bfloat16)

        # Contract on the last axis of both operands: no explicit .T / XLU transpose.
        dn = (((1,), (1,)), ((), ()))
        s = (jax.lax.dot_general(qr_ref[0], kr1, dn,
                                 preferred_element_type=jnp.float32) +
             jax.lax.dot_general(qr_ref[1], kr2, dn,
                                 preferred_element_type=jnp.float32))

        row = qi * bt + jax.lax.broadcasted_iota(jnp.int32, s.shape, 0)
        col = kj * bt + jax.lax.broadcasted_iota(jnp.int32, s.shape, 1)
        s = jnp.where(col <= row, s, _NEG_INF)

        m_prev = m_ref[...]
        m_new = jnp.maximum(m_prev, jnp.max(s, axis=-1, keepdims=True))
        alpha = jnp.exp(m_prev - m_new)
        p = jnp.exp(s - m_new)
        l_ref[...] = alpha * l_ref[...] + jnp.sum(p, axis=-1, keepdims=True)
        acc_ref[...] = alpha * acc_ref[...] + jnp.dot(
            p.astype(jnp.bfloat16), v_ref[0, 0],
            preferred_element_type=jnp.float32)
        m_ref[...] = m_new

    @pl.when(kj == qi)  # last kv tile needed for this q tile -> finalize
    def _finalize():
        inv_l = pl.reciprocal(l_ref[...], approx=True)
        o_ref[0, 0] = (acc_ref[...] * inv_l).astype(o_ref.dtype)


# ---------------------------------------------------------------------------
# Module wrapper (parameter setup + layout glue in plain JAX)
# ---------------------------------------------------------------------------
class GroupedQueryAttentionPallas:
    def __init__(self, n_heads, kv_heads, n_embed, head_dim, max_len, key):
        assert n_heads % kv_heads == 0
        self.n_heads = n_heads
        self.kv_heads = kv_heads
        self.head_dim = head_dim
        self.max_len = max_len
        self.repeat = n_heads // kv_heads
        assert self.repeat == 3, "torch module hard-codes k.repeat(1, 1, 3)"
        assert n_embed == n_heads * head_dim, "module assumes n_embed == n_heads*head_dim"
        assert head_dim % 2 == 0

        kq, kk, kv, ko = jax.random.split(key, 4)

        def init(k, out_f, in_f):  # nn.Linear default: U(-1/sqrt(in), 1/sqrt(in))
            bound = 1.0 / math.sqrt(in_f)
            return jax.random.uniform(k, (out_f, in_f), jnp.float32, -bound, bound)

        # f32 "master" params (used by the pure-JAX reference).
        self.w_q = init(kq, head_dim * n_heads, n_embed)
        self.w_k = init(kk, head_dim * kv_heads, n_embed)
        self.w_v = init(kv, head_dim * kv_heads, n_embed)
        self.w_o = init(ko, n_embed, head_dim * n_heads)

        # Kernel-facing params, prepared once:
        #  * fused + pre-transposed QKV weight (x read once, no per-call transpose)
        #  * o_proj weight with the GQA repeat folded in:
        #      p @ tile(v,3) == tile(p@v,3)  =>  y = pv @ (sum of the 3 repeated Wo blocks)^T
        self.w_qkv_t = jnp.concatenate(
            [self.w_q.T, self.w_k.T, self.w_v.T], axis=1).astype(jnp.bfloat16)
        G, hd, rep = kv_heads, head_dim, self.repeat
        w_o_fold = self.w_o.reshape(n_embed, G, rep, hd).sum(axis=2)     # (n_embed, G, hd)
        self.w_o_fold_t = w_o_fold.reshape(n_embed, G * hd).T.astype(jnp.bfloat16)

    def __call__(self, x):
        B, T, C = x.shape
        assert T < self.max_len  # mirrors the torch module (arguably should be <=)
        G, hd, rep = self.kv_heads, self.head_dim, self.repeat
        D3 = rep * hd
        Dh = D3 // 2

        # ---- fused QKV projection (one tiled matmul) ----
        x2d = x.reshape(B * T, C)
        qkv = matmul_pallas(x2d, self.w_qkv_t, out_dtype=jnp.bfloat16)
        nq_cols = self.n_heads * hd
        q = qkv[:, :nq_cols].reshape(B, T, G, D3)
        k = qkv[:, nq_cols:nq_cols + G * hd].reshape(B, T, G, hd)
        v = qkv[:, nq_cols + G * hd:].reshape(B, T, G, hd)

        # ---- layout glue: RoPE halves on a leading axis, V left un-repeated ----
        q_halves = q.reshape(B, T, G, 2, Dh).transpose(0, 2, 3, 1, 4)      # (B,G,2,T,Dh)
        # halves of the implicitly-repeated K (rope over D3 mixes the 3 copies):
        k_h1 = jnp.concatenate([k, k[..., :hd // 2]], axis=-1)             # (B,T,G,Dh)
        k_h2 = jnp.concatenate([k[..., hd // 2:], k], axis=-1)             # (B,T,G,Dh)
        k_halves = jnp.stack([k_h1, k_h2], axis=3).transpose(0, 2, 3, 1, 4)  # (B,G,2,T,Dh)
        v_g = v.transpose(0, 2, 1, 3)                                      # (B,G,T,hd)

        # ---- pad T to a multiple of the flash tile (causal mask handles the pad) ----
        t_pad = -(-T // 8) * 8
        block_t = min(128, t_pad)
        t_pad = -(-T // block_t) * block_t
        if t_pad != T:
            pad = t_pad - T
            q_halves = jnp.pad(q_halves, ((0, 0), (0, 0), (0, 0), (0, pad), (0, 0)))
            k_halves = jnp.pad(k_halves, ((0, 0), (0, 0), (0, 0), (0, pad), (0, 0)))
            v_g = jnp.pad(v_g, ((0, 0), (0, 0), (0, pad), (0, 0)))

        # ---- RoPE tables (SDPA scale folded into q's tables) ----
        inv_freq = 1.0 / (10000.0 ** (jnp.arange(Dh, dtype=jnp.float32) * 2.0 / D3))
        ang = jnp.arange(t_pad, dtype=jnp.float32)[:, None] * inv_freq[None, :]
        cos, sin = jnp.cos(ang), jnp.sin(ang)
        scale = 1.0 / math.sqrt(D3)
        cos_q, sin_q = cos * scale, sin * scale
        cos_k, sin_k = cos, sin

        nq = t_pad // block_t
        kv_idx = lambda b, g, qi, kj: jax.lax.min(kj, qi)  # skip DMAs of masked tiles

        out_g = pl.pallas_call(
            _gqa_flash_kernel,
            out_shape=jax.ShapeDtypeStruct((B, G, t_pad, hd), jnp.bfloat16),
            grid=(B, G, nq, nq),
            in_specs=[
                pl.BlockSpec((1, 1, 2, block_t, Dh),
                             lambda b, g, qi, kj: (b, g, 0, qi, 0)),
                pl.BlockSpec((1, 1, 2, block_t, Dh),
                             lambda b, g, qi, kj: (b, g, 0, kv_idx(b, g, qi, kj), 0)),
                pl.BlockSpec((1, 1, block_t, hd),
                             lambda b, g, qi, kj: (b, g, kv_idx(b, g, qi, kj), 0)),
                pl.BlockSpec((block_t, Dh), lambda b, g, qi, kj: (qi, 0)),
                pl.BlockSpec((block_t, Dh), lambda b, g, qi, kj: (qi, 0)),
                pl.BlockSpec((block_t, Dh),
                             lambda b, g, qi, kj: (kv_idx(b, g, qi, kj), 0)),
                pl.BlockSpec((block_t, Dh),
                             lambda b, g, qi, kj: (kv_idx(b, g, qi, kj), 0)),
            ],
            out_specs=pl.BlockSpec((1, 1, block_t, hd),
                                   lambda b, g, qi, kj: (b, g, qi, 0)),
            scratch_shapes=[
                pltpu.VMEM((2, block_t, Dh), jnp.bfloat16),   # cached rope(q)
                pltpu.VMEM((block_t, 1), jnp.float32),        # m
                pltpu.VMEM((block_t, 1), jnp.float32),        # l
                pltpu.VMEM((block_t, hd), jnp.float32),       # acc
            ],
            compiler_params=pltpu.CompilerParams(
                dimension_semantics=("parallel", "parallel", "parallel", "arbitrary"),
                vmem_limit_bytes=_VMEM_LIMIT),
        )(q_halves, k_halves, v_g, cos_q, sin_q, cos_k, sin_k)

        # (B,G,T,hd) -> (B*T, G*hd); the x3 repeat is folded into w_o_fold_t.
        attn = out_g[:, :, :T, :].transpose(0, 2, 1, 3).reshape(B * T, G * hd)
        y = matmul_pallas(attn, self.w_o_fold_t, out_dtype=jnp.float32)
        return y.reshape(B, T, C)


# ---------------------------------------------------------------------------
# Pure-JAX reference (mirrors the torch forward) for a correctness check
# ---------------------------------------------------------------------------
def _rope_ref(x):
    T, D = x.shape[-2], x.shape[-1]
    Dh = D // 2
    inv_freq = 1.0 / (10000.0 ** (jnp.arange(Dh, dtype=jnp.float32) * 2.0 / D))
    ang = jnp.arange(T, dtype=jnp.float32)[:, None] * inv_freq[None, :]
    cos, sin = jnp.cos(ang), jnp.sin(ang)
    x1, x2 = x[..., :Dh], x[..., Dh:]
    return jnp.concatenate([x1 * cos - x2 * sin, x2 * cos + x1 * sin], axis=-1)


def reference_forward(m, x):
    B, T, C = x.shape
    q = x @ m.w_q.T
    k = x @ m.w_k.T
    v = x @ m.w_v.T
    rep, hd, G = m.repeat, m.head_dim, m.kv_heads
    D3 = rep * hd
    mask = jnp.tril(jnp.ones((T, T), dtype=bool))
    outs = []
    for i in range(G):
        qi = _rope_ref(q[:, :, i * D3:(i + 1) * D3])
        ki = _rope_ref(jnp.tile(k[:, :, i * hd:(i + 1) * hd], (1, 1, rep)))
        vi = jnp.tile(v[:, :, i * hd:(i + 1) * hd], (1, 1, rep))
        s = jnp.einsum('btd,bsd->bts', qi, ki) / math.sqrt(D3)
        s = jnp.where(mask, s, -jnp.inf)
        p = jax.nn.softmax(s, axis=-1)
        outs.append(jnp.einsum('bts,bsd->btd', p, vi))
    out = jnp.concatenate(outs, axis=-1)
    return out @ m.w_o.T


# ---------------------------------------------------------------------------
if __name__ == "__main__":
    key = jax.random.PRNGKey(0)
    kparam, kx = jax.random.split(key)

    B, T = 2, 8
    n_heads, kv_heads, head_dim = 6, 2, 8      # repeat == 3 as the torch module requires
    n_embed = n_heads * head_dim               # 48
    max_len = 16

    model = GroupedQueryAttentionPallas(n_heads, kv_heads, n_embed, head_dim,
                                        max_len, kparam)
    x = jax.random.normal(kx, (B, T, n_embed), dtype=jnp.float32)

    y = model(x)
    jax.block_until_ready(y)

    y_ref = reference_forward(model, x)
    assert y.shape == (B, T, n_embed)
    # Kernel path uses bf16 MXU operands (f32 accumulation); reference is pure f32.
    assert jnp.allclose(y, y_ref, atol=3e-2, rtol=3e-2), "mismatch vs pure-JAX reference"

    print("KERNEL_OK")
</pallas_src>

<mosaic_0001>
module attributes {stable_mosaic.version = 11 : i64} {
  func.func @_matmul_kernel(%arg0: i32, %arg1: i32, %arg2: i32, %arg3: memref<16x48xf32, #tpu.memory_space<vmem>>, %arg4: memref<48x80xbf16, #tpu.memory_space<vmem>>, %arg5: memref<16x80xbf16, #tpu.memory_space<vmem>>, %arg6: memref<16x80xf32, #tpu.memory_space<vmem>>) attributes {dimension_semantics = [#tpu.dimension_semantics<parallel>, #tpu.dimension_semantics<parallel>, #tpu.dimension_semantics<arbitrary>], iteration_bounds = array<i64: 1, 1, 1>, scalar_prefetch = 0 : i64, scratch_operands = 1 : i64, tpu.core_type = #tpu.core_type<tc>, window_params = [{transform_indices = @transform_0, window_bounds = array<i64: 16, 48>}, {transform_indices = @transform_1, window_bounds = array<i64: 48, 80>}, {transform_indices = @transform_2, window_bounds = array<i64: 16, 80>}]} {
    %c0_i32 = arith.constant 0 : i32
    %0 = arith.cmpi eq, %arg2, %c0_i32 : i32
    %1 = arith.extui %0 : i1 to i32
    %c0_i32_0 = arith.constant 0 : i32
    %2 = arith.cmpi ne, %1, %c0_i32_0 : i32
    scf.if %2 {
      %cst_10 = arith.constant 0.000000e+00 : f32
      %13 = vector.broadcast %cst_10 : f32 to vector<16x80xf32>
      %c0_11 = arith.constant 0 : index
      %c0_12 = arith.constant 0 : index
      %14 = vector.load %arg6[%c0_11, %c0_12] : memref<16x80xf32, #tpu.memory_space<vmem>>, vector<16x80xf32>
      tpu.vector_store %arg6[%c0_11, %c0_12], %13 {strides = array<i32>} : memref<16x80xf32, #tpu.memory_space<vmem>>, vector<16x80xf32>,
    } else {
    }
    %c0 = arith.constant 0 : index
    %c0_1 = arith.constant 0 : index
    %3 = vector.load %arg6[%c0, %c0_1] : memref<16x80xf32, #tpu.memory_space<vmem>>, vector<16x80xf32>
    %c0_2 = arith.constant 0 : index
    %c0_3 = arith.constant 0 : index
    %4 = vector.load %arg3[%c0_2, %c0_3] : memref<16x48xf32, #tpu.memory_space<vmem>>, vector<16x48xf32>
    %5 = arith.truncf %4 : vector<16x48xf32> to vector<16x48xbf16>
    %c0_4 = arith.constant 0 : index
    %c0_5 = arith.constant 0 : index
    %6 = vector.load %arg4[%c0_4, %c0_5] : memref<48x80xbf16, #tpu.memory_space<vmem>>, vector<48x80xbf16>
    %cst = arith.constant dense<0.000000e+00> : vector<16x80xf32>
    %7 = tpu.matmul %5, %6, %cst {dimension_numbers = #tpu.dot_dimension_numbers<[1], [0], [0], [1], [0, 0, 1, 1], [], []>} : vector<16x48xbf16>, vector<48x80xbf16>, vector<16x80xf32> -> vector<16x80xf32>
    %8 = arith.addf %3, %7 : vector<16x80xf32>
    %c0_6 = arith.constant 0 : index
    %c0_7 = arith.constant 0 : index
    %9 = vector.load %arg6[%c0_6, %c0_7] : memref<16x80xf32, #tpu.memory_space<vmem>>, vector<16x80xf32>
    tpu.vector_store %arg6[%c0_6, %c0_7], %8 {strides = array<i32>} : memref<16x80xf32, #tpu.memory_space<vmem>>, vector<16x80xf32>,
    %c0_i32_8 = arith.constant 0 : i32
    %10 = arith.cmpi eq, %arg2, %c0_i32_8 : i32
    %11 = arith.extui %10 : i1 to i32
    %c0_i32_9 = arith.constant 0 : i32
    %12 = arith.cmpi ne, %11, %c0_i32_9 : i32
    scf.if %12 {
      %c0_10 = arith.constant 0 : index
      %c0_11 = arith.constant 0 : index
      %13 = vector.load %arg6[%c0_10, %c0_11] : memref<16x80xf32, #tpu.memory_space<vmem>>, vector<16x80xf32>
      %14 = arith.truncf %13 : vector<16x80xf32> to vector<16x80xbf16>
      %c0_12 = arith.constant 0 : index
      %c0_13 = arith.constant 0 : index
      %15 = vector.load %arg5[%c0_12, %c0_13] : memref<16x80xbf16, #tpu.memory_space<vmem>>, vector<16x80xbf16>
      tpu.vector_store %arg5[%c0_12, %c0_13], %14 {strides = array<i32>} : memref<16x80xbf16, #tpu.memory_space<vmem>>, vector<16x80xbf16>,
    } else {
    }
    return
  }
  func.func @transform_0(%arg0: i32, %arg1: i32, %arg2: i32) -> (i32, i32) {
    %c0_i32 = arith.constant 0 : i32
    return %arg0, %arg2 : i32, i32
  }
  func.func @transform_1(%arg0: i32, %arg1: i32, %arg2: i32) -> (i32, i32) {
    %c0_i32 = arith.constant 0 : i32
    return %arg2, %arg1 : i32, i32
  }
  func.func @transform_2(%arg0: i32, %arg1: i32, %arg2: i32) -> (i32, i32) {
    %c0_i32 = arith.constant 0 : i32
    return %arg0, %arg1 : i32, i32
  }
}

</mosaic_0001>

<bundles_post_ra>
// kernel: tpu_custom_call.1
= control target key start
LH: loop header
LB: loop body
LE: loop exit
PB: predicated region body
PF: predicated region fallthrough
CT: control target
= control target key end

     0   :  { %7 = vsyncpa [#allocation4], 0  ;;  %s278_s0 = inlined_call_operand.hbm [shape: f32[16,48], index: 0, kind: input, shape index: {}]   ;;  %s279_s1 = inlined_call_operand.hbm [shape: bf16[48,80], index: 1, kind: input, shape index: {}]   ;;  %s280_s2 = inlined_call_operand.hbm [shape: bf16[16,80], index: 2, kind: output, shape index: {}]  }
   0x1   :  { %8 = vsyncpa [#allocation7], 0 }
   0x2   :  { %9 = vsyncpa [#allocation5], 0  ;;  %s14_s11 = sshll.u32 %s278_s0, 4  ;;  %s236_s12 = smov [#allocation3]   ;;  %s15_s11 = int_to_ptr.hbm [resolvable:$true] %s14_s11 }
   0x3   :  { %s16_s13 = sshll.u32 %s236_s12, 4  ;;  %s27_s16 = sshll.u32 %s279_s1, 4  ;;  %s17_s13 = int_to_ptr.vmem [resolvable:$true] %s16_s13  ;;  %s28_s16 = int_to_ptr.hbm [resolvable:$true] %s27_s16 }
   0x4   :  { %s237_s17 = smov 128   ;;  %s238_s18 = smov 8  }
   0x5   :  { %22 = dma.hbm_to_vmem [thread:$0]  %s15_s11, 256, %s17_s13, [#allocation4], %s237_s17, %s237_s17, %s238_s18  }
   0x6   :  { %s239_s19 = smov [#allocation6]   ;;  %s240_s21 = smov 64  }
   0x7   :  { %s29_s20 = sshll.u32 %s239_s19, 4  ;;  %s241_s22 = smov 4   ;;  %s30_s20 = int_to_ptr.vmem [resolvable:$true] %s29_s20 }
   0x8   :  { %35 = dma.hbm_to_vmem [thread:$0]  %s28_s16, 384, %s30_s20, [#allocation7], %s240_s21, %s240_s21, %s241_s22  }
   0x9   :  { %230 = dma.done.wait [#allocation4], 256  }
   0xa   :  { %231 = vsyncadd [#allocation4], 4294967040 }
   0xb   :  { %232 = dma.done.wait [#allocation7], 384  }
   0xc   :  { %233 = vsyncadd [#allocation7], 4294966912  ;;  %vm49_vm0 = vcmask 654336   ;;  %v242_v0 = vmov 0.0   ;;  %v149_v1 = vld [vmem:[#allocation6 + $0x10] sm:$0xff]  ;;  %v148_v2 = vld [vmem:[#allocation6 + $0x8] sm:$0xff] }
   0xd   :  { %50 = vst.msk [vmem:[#allocation2] sm:$0xff] %vm49_vm0, %v242_v0  ;;  %90 = vmatpush.bf16.msra.mxu0 %v149_v1  ;;  %v147_v3 = vld [vmem:[#allocation6] sm:$0xff]  ;;  %v54_v4 = vld [vmem:[#allocation3] sm:$0xff]  ;;  %v55_v5 = vld [vmem:[#allocation3 + $0x8] sm:$0xff]  ;;  %vm81_vm1 = vcmask 392192   ;;  %vm111_vm2 = vcmask 650240  }
   0xe   :  { %51 = vst.msk [vmem:[#allocation2 + $0x8] sm:$0xff] %vm49_vm0, %v242_v0  ;;  %v56_v6 = vpack.c.bf16 %v55_v5, %v54_v4  ;;  %s243_s0 = smov [#allocation8]   ;;  %s120_s25 = sshll.u32 %s280_s2, 4  ;;  %s121_s25 = int_to_ptr.hbm [resolvable:$true] %s120_s25 }
   0xf   :  { %s118_s1 = sshll.u32 %s243_s0, 4  ;;  %s119_s1 = int_to_ptr.vmem [resolvable:$true] %s118_s1 }
  0x11   :  { %91 = vmatpush.bf16.msra.mxu0 %v148_v2 }
  0x14   :  { %v52_v7 = vld [vmem:[#allocation2] sm:$0xff] }
  0x15   :  { %92 = vmatpush.bf16.msra.mxu0 %v147_v3  ;;  %v53_v10 = vld [vmem:[#allocation2 + $0x8] sm:$0xff] }
  0x18   :  { %146 = vmatmul.msk.bf16.vlgmr.msra.gmra.mxu0 %vm81_vm1, %v56_v6 }
  0x95   :  { %v94_v8 = vpop.f32.mrf.mxu0 }
  0x96   :  { %v99_v9 = vadd.f32 %v94_v8, %v52_v7 }
  0x98   :  { %102 = vst.msk [vmem:[#allocation2] sm:$0xff] %vm49_vm0, %v99_v9 }
  0x9d   :  { %v96_v11 = vpop.f32.mrf.mxu0 }
  0x9e   :  { %v100_v12 = vadd.f32 %v96_v11, %v53_v10 }
  0x9f   :  { %v107_v13 = vld [vmem:[#allocation2] sm:$0xff] }
  0xa0   :  { %103 = vst.msk [vmem:[#allocation2 + $0x8] sm:$0xff] %vm49_vm0, %v100_v12  ;;  %v109_v14 = vpack.c.bf16 %v107_v13, %v107_v13 }
  0xa2   :  { %112 = vst.msk [vmem:[#allocation8] sm:$0xf] %vm111_vm2, %v109_v14 }
  0xa7   :  { %v108_v15 = vld [vmem:[#allocation2 + $0x8] sm:$0xff] }
  0xa8   :  { %v110_v16 = vpack.c.bf16 %v108_v15, %v108_v15 }
  0xaa   :  { %113 = vst.msk [vmem:[#allocation8 + $0x4] sm:$0xf] %vm111_vm2, %v110_v16 }
  0xab   :  { %126 = dma.vmem_to_hbm [thread:$0]  %s119_s1, 128, %s121_s25, [#allocation5], %s240_s21, %s240_s21, %s241_s22  }
  0xac   :  { %234 = dma.done.wait [#allocation5], 128  }
  0xad   :  { %235 = vsyncadd [#allocation5], 4294967168 }
  0xae   :  { %131 = vsyncpa [#allocation4], 1 }
  0xaf   :  { %132 = vsyncpa [#allocation7], 1 }
  0xb0   :  { %133 = vsyncpa [#allocation5], 1 }

</bundles_post_ra>
